<compile_context>
chip_gen: v6e
topology: v6e:2x2x1
jax: 0.10.0
libtpu: 0.0.40
codegen_flags: <defaults>
</compile_context>

<pallas_src>
import functools

import numpy as np
import jax
import jax.numpy as jnp
from jax.experimental import pallas as pl
from jax.experimental.pallas import tpu as pltpu


# ----------------------------------------------------------------------------
# Parameter construction (deterministic, mirrors the PyTorch __init__)
# ----------------------------------------------------------------------------
def create_sinusoidal_embeddings(n_pos: int, dim: int) -> np.ndarray:
    """Same math as the PyTorch helper, returns (n_pos, dim) float32."""
    position_enc = np.array(
        [[pos / np.power(10000, 2 * (j // 2) / dim) for j in range(dim)]
         for pos in range(n_pos)],
        dtype=np.float64,
    )
    out = np.zeros((n_pos, dim), dtype=np.float32)
    out[:, 0::2] = np.sin(position_enc[:, 0::2]).astype(np.float32)
    out[:, 1::2] = np.cos(position_enc[:, 1::2]).astype(np.float32)
    return out


# ----------------------------------------------------------------------------
# Pallas kernel: x + pos_emb, then LayerNorm(d_model, eps=1e-12)
# ----------------------------------------------------------------------------
def _embeddings_kernel(x_ref, pos_ref, gamma_ref, beta_ref, o_ref, *,
                       n_pos_blocks: int):
    # x_ref           : (TILE_R, D)   flattened activation row tile
    # pos_ref         : (S_pad, D)    VMEM-resident position table (constant block)
    # gamma_ref/beta_ref : (1, D)     LayerNorm affine params (resident)
    tile_r = x_ref.shape[0]

    if n_pos_blocks == 1:
        pos = pos_ref[...]
    else:
        # Row offset into the resident pos table for this grid step.
        off = pl.multiple_of((pl.program_id(0) % n_pos_blocks) * tile_r, 8)
        pos = pos_ref[pl.ds(off, tile_r), :]

    h = x_ref[...].astype(jnp.float32) + pos.astype(jnp.float32)

    # LayerNorm over the last dim (biased variance, eps=1e-12), like nn.LayerNorm.
    mean = jnp.mean(h, axis=-1, keepdims=True)
    centered = h - mean
    var = jnp.mean(centered * centered, axis=-1, keepdims=True)
    inv_std = jax.lax.rsqrt(var + 1e-12)

    out = (centered * inv_std) * gamma_ref[...].astype(jnp.float32) \
          + beta_ref[...].astype(jnp.float32)

    # TODO(synk): dropout omitted (inference / eval mode => identity).
    o_ref[...] = out.astype(o_ref.dtype)


def _pick_tile_rows(s_pad: int, rows: int, d: int, itemsize: int,
                    budget_bytes: int) -> int:
    """Pick TILE_R: a multiple of 8 dividing s_pad.

    Largest tile whose input slab fits `budget_bytes`, preferring tiles that
    still leave >= 8 grid steps (so v7x's two TensorCores each get >= 4
    pipelined steps).
    """
    candidates = [t for t in range(8, s_pad + 1, 8)
                  if s_pad % t == 0 and t * d * itemsize <= budget_bytes]
    if not candidates:
        candidates = [8]
    preferred = [t for t in candidates if rows // t >= 8]
    return max(preferred) if preferred else max(candidates)


def embeddings_forward(x, pos_table, gamma, beta, *,
                       tile_budget_bytes=4 << 20,
                       vmem_cap_bytes=48 << 20):
    """x: (B, S, D); pos_table: (max_pos, D); gamma/beta: (D,)."""
    B, S, D = x.shape
    max_pos, Dp = pos_table.shape
    assert Dp == D and S <= max_pos

    # --- Pad S up to a multiple of 8 (replaces the old whole-array fallback).
    S_pad = ((S + 7) // 8) * 8
    pos_active = pos_table[:S]
    if S_pad != S:
        x = jnp.pad(x, ((0, 0), (0, S_pad - S), (0, 0)))
        pos_active = jnp.pad(pos_active, ((0, S_pad - S), (0, 0)))

    # Resident pos table: drop to bf16 if it would be large (compute is f32).
    if S_pad * D * 4 > (8 << 20):
        pos_active = pos_active.astype(jnp.bfloat16)

    rows = B * S_pad
    x_flat = x.reshape(rows, D)
    gamma2 = gamma.reshape(1, D)
    beta2 = beta.reshape(1, D)

    in_item = x_flat.dtype.itemsize
    out_item = in_item                      # output dtype == input dtype
    pos_item = pos_active.dtype.itemsize

    tile_r = _pick_tile_rows(S_pad, rows, D, in_item, tile_budget_bytes)
    n_pos_blocks = S_pad // tile_r
    grid = (rows // tile_r,)

    # Real per-call VMEM plan: double-buffered in/out tiles + resident pos +
    # affine params + f32 intermediates headroom.
    plan = (2 * tile_r * D * in_item
            + 2 * tile_r * D * out_item
            + S_pad * D * pos_item
            + 2 * D * 4
            + 2 * tile_r * D * 4)
    vmem_limit = int(min(vmem_cap_bytes, max(2 * plan, 16 << 20)))

    kernel = functools.partial(_embeddings_kernel, n_pos_blocks=n_pos_blocks)

    out_flat = pl.pallas_call(
        kernel,
        out_shape=jax.ShapeDtypeStruct((rows, D), x.dtype),
        grid_spec=pltpu.PrefetchScalarGridSpec(
            num_scalar_prefetch=0,
            grid=grid,
            in_specs=[
                pl.BlockSpec((tile_r, D), lambda i: (i, 0)),   # x rows (streamed)
                pl.BlockSpec((S_pad, D), lambda i: (0, 0)),    # pos (VMEM-resident)
                pl.BlockSpec((1, D), lambda i: (0, 0)),        # gamma (resident)
                pl.BlockSpec((1, D), lambda i: (0, 0)),        # beta  (resident)
            ],
            out_specs=pl.BlockSpec((tile_r, D), lambda i: (i, 0)),
        ),
        compiler_params=pltpu.CompilerParams(
            dimension_semantics=("parallel",),
            vmem_limit_bytes=vmem_limit),
        cost_estimate=pl.CostEstimate(
            flops=8 * rows * D,
            transcendentals=rows,
            bytes_accessed=rows * D * (in_item + out_item) + S_pad * D * pos_item),
    )(x_flat, pos_active, gamma2, beta2)

    out = out_flat.reshape(B, S_pad, D)
    if S_pad != S:
        out = out[:, :S, :]
    return out


# ----------------------------------------------------------------------------
# Pure-JAX reference (for sanity check)
# ----------------------------------------------------------------------------
def embeddings_ref(x, pos_table, gamma, beta):
    B, S, D = x.shape
    h = x + pos_table[:S][None, :, :]
    mean = jnp.mean(h, axis=-1, keepdims=True)
    var = jnp.mean((h - mean) ** 2, axis=-1, keepdims=True)
    norm = (h - mean) / jnp.sqrt(var + 1e-12)
    return norm * gamma + beta


if __name__ == "__main__":
    # Module config (small, consistent with the forward pass).
    d_model = 32
    language_len = 8
    vision_len = 8
    max_pos = language_len + vision_len
    sinusoidal_pos_embds = True

    # Deterministic parameters.
    if sinusoidal_pos_embds:
        pos_table = jnp.asarray(create_sinusoidal_embeddings(max_pos, d_model))
    else:
        pos_table = jax.random.normal(
            jax.random.PRNGKey(1), (max_pos, d_model), dtype=jnp.float32)
    gamma = jnp.ones((d_model,), dtype=jnp.float32)   # nn.LayerNorm init
    beta = jnp.zeros((d_model,), dtype=jnp.float32)

    # Deterministic input: (B, S, D) = (2, 8, 32).
    B, S = 2, 8
    x = jax.random.normal(jax.random.PRNGKey(0), (B, S, d_model),
                          dtype=jnp.float32)

    out = embeddings_forward(x, pos_table, gamma, beta)
    out = jax.block_until_ready(out)

    ref = embeddings_ref(x, pos_table, gamma, beta)
    np.testing.assert_allclose(np.asarray(out), np.asarray(ref),
                               rtol=1e-5, atol=1e-5)

    print("KERNEL_OK")
</pallas_src>

<mosaic_0001>
module attributes {stable_mosaic.version = 11 : i64} {
  func.func @_embeddings_kernel(%arg0: i32, %arg1: memref<8x32xf32, #tpu.memory_space<vmem>>, %arg2: memref<8x32xf32, #tpu.memory_space<vmem>>, %arg3: memref<1x32xf32, #tpu.memory_space<vmem>>, %arg4: memref<1x32xf32, #tpu.memory_space<vmem>>, %arg5: memref<8x32xf32, #tpu.memory_space<vmem>>) attributes {dimension_semantics = [#tpu.dimension_semantics<parallel>], iteration_bounds = array<i64: 2>, scalar_prefetch = 0 : i64, scratch_operands = 0 : i64, tpu.core_type = #tpu.core_type<tc>, window_params = [{transform_indices = @transform_0, window_bounds = array<i64: 8, 32>}, {pipeline_mode = #tpu.pipeline_mode<synchronous>, transform_indices = @transform_1, window_bounds = array<i64: 8, 32>}, {pipeline_mode = #tpu.pipeline_mode<synchronous>, transform_indices = @transform_2, window_bounds = array<i64: 1, 32>}, {pipeline_mode = #tpu.pipeline_mode<synchronous>, transform_indices = @transform_3, window_bounds = array<i64: 1, 32>}, {transform_indices = @transform_4, window_bounds = array<i64: 8, 32>}]} {
    %c0 = arith.constant 0 : index
    %c0_0 = arith.constant 0 : index
    %0 = vector.load %arg2[%c0, %c0_0] : memref<8x32xf32, #tpu.memory_space<vmem>>, vector<8x32xf32>
    %c0_1 = arith.constant 0 : index
    %c0_2 = arith.constant 0 : index
    %1 = vector.load %arg1[%c0_1, %c0_2] : memref<8x32xf32, #tpu.memory_space<vmem>>, vector<8x32xf32>
    %2 = arith.addf %1, %0 : vector<8x32xf32>
    %cst = arith.constant dense<0.000000e+00> : vector<8xf32>
    %3 = vector.multi_reduction <add>, %2, %cst [1] : vector<8x32xf32> to vector<8xf32>
    %4 = vector.shape_cast %3 : vector<8xf32> to vector<8x1xf32>
    %cst_3 = arith.constant 3.200000e+01 : f32
    %5 = vector.broadcast %cst_3 : f32 to vector<8x1xf32>
    %6 = arith.divf %4, %5 : vector<8x1xf32>
    %7 = vector.broadcast %6 : vector<8x1xf32> to vector<8x32xf32>
    %8 = arith.subf %2, %7 : vector<8x32xf32>
    %9 = arith.mulf %8, %8 : vector<8x32xf32>
    %cst_4 = arith.constant dense<0.000000e+00> : vector<8xf32>
    %10 = vector.multi_reduction <add>, %9, %cst_4 [1] : vector<8x32xf32> to vector<8xf32>
    %11 = vector.shape_cast %10 : vector<8xf32> to vector<8x1xf32>
    %cst_5 = arith.constant 3.200000e+01 : f32
    %12 = vector.broadcast %cst_5 : f32 to vector<8x1xf32>
    %13 = arith.divf %11, %12 : vector<8x1xf32>
    %cst_6 = arith.constant 9.99999996E-13 : f32
    %14 = vector.broadcast %cst_6 : f32 to vector<8x1xf32>
    %15 = arith.addf %13, %14 : vector<8x1xf32>
    %16 = math.rsqrt %15 : vector<8x1xf32>
    %17 = vector.broadcast %16 : vector<8x1xf32> to vector<8x32xf32>
    %18 = arith.mulf %8, %17 : vector<8x32xf32>
    %c0_7 = arith.constant 0 : index
    %c0_8 = arith.constant 0 : index
    %19 = vector.load %arg3[%c0_7, %c0_8] : memref<1x32xf32, #tpu.memory_space<vmem>>, vector<1x32xf32>
    %20 = vector.broadcast %19 : vector<1x32xf32> to vector<8x32xf32>
    %21 = arith.mulf %18, %20 : vector<8x32xf32>
    %c0_9 = arith.constant 0 : index
    %c0_10 = arith.constant 0 : index
    %22 = vector.load %arg4[%c0_9, %c0_10] : memref<1x32xf32, #tpu.memory_space<vmem>>, vector<1x32xf32>
    %23 = vector.broadcast %22 : vector<1x32xf32> to vector<8x32xf32>
    %24 = arith.addf %21, %23 : vector<8x32xf32>
    %c0_11 = arith.constant 0 : index
    %c0_12 = arith.constant 0 : index
    %25 = vector.load %arg5[%c0_11, %c0_12] : memref<8x32xf32, #tpu.memory_space<vmem>>, vector<8x32xf32>
    tpu.vector_store %arg5[%c0_11, %c0_12], %24 {strides = array<i32>} : memref<8x32xf32, #tpu.memory_space<vmem>>, vector<8x32xf32>,
    return
  }
  func.func @transform_0(%arg0: i32) -> (i32, i32) {
    %c0_i32 = arith.constant 0 : i32
    %c0_i32_0 = arith.constant 0 : i32
    return %arg0, %c0_i32 : i32, i32
  }
  func.func @transform_1(%arg0: i32) -> (i32, i32) {
    %c0_i32 = arith.constant 0 : i32
    %c0_i32_0 = arith.constant 0 : i32
    %c0_i32_1 = arith.constant 0 : i32
    return %c0_i32, %c0_i32_0 : i32, i32
  }
  func.func @transform_2(%arg0: i32) -> (i32, i32) {
    %c0_i32 = arith.constant 0 : i32
    %c0_i32_0 = arith.constant 0 : i32
    %c0_i32_1 = arith.constant 0 : i32
    return %c0_i32, %c0_i32_0 : i32, i32
  }
  func.func @transform_3(%arg0: i32) -> (i32, i32) {
    %c0_i32 = arith.constant 0 : i32
    %c0_i32_0 = arith.constant 0 : i32
    %c0_i32_1 = arith.constant 0 : i32
    return %c0_i32, %c0_i32_0 : i32, i32
  }
  func.func @transform_4(%arg0: i32) -> (i32, i32) {
    %c0_i32 = arith.constant 0 : i32
    %c0_i32_0 = arith.constant 0 : i32
    return %arg0, %c0_i32 : i32, i32
  }
}

</mosaic_0001>

<bundles_post_ra>
// kernel: tpu_custom_call.1
= control target key start
LH: loop header
LB: loop body
LE: loop exit
PB: predicated region body
PF: predicated region fallthrough
CT: control target
= control target key end

     0   :  { %9 = vsyncpa [#allocation3], 0  ;;  %s757_s0 = inlined_call_operand.hbm [shape: f32[16,32], index: 0, kind: input, shape index: {}]   ;;  %s758_s1 = inlined_call_operand.hbm [shape: f32[8,32], index: 1, kind: input, shape index: {}]   ;;  %s759_s2 = inlined_call_operand.vmem [shape: f32[1,32], index: 2, kind: input, shape index: {}]   ;;  %s760_s3 = inlined_call_operand.vmem [shape: f32[1,32], index: 3, kind: input, shape index: {}]   ;;  %s761_s4 = inlined_call_operand.hbm [shape: f32[16,32], index: 4, kind: output, shape index: {}]  }
   0x1   :  { %11 = vsyncpa [#allocation3 + $0x1], 0 }
   0x2   :  { %12 = vsyncpa [#allocation6], 0 }
   0x3   :  { %13 = vsyncpa [#allocation4], 0 }
   0x4   :  { %15 = vsyncpa [#allocation4 + $0x1], 0  ;;  %s582_s15 = smov 0   ;;  %s584_s16 = smov 0  }
   0x5   :  { %s586_s17 = smov 0   ;;  %s588_s18 = smov 0  }
   0x6 LB: > { %s603_s19 = sadd.s32 4294967295, %s552_s18   ;;  %s355_s20 = sadd.s32 4294967294, %s552_s18   ;;  %s552_s18 = sphi %s588_s18, %s784_s18   ;;  %s548_s17 = sphi %s586_s17, %s783_s17   ;;  %s544_s16 = sphi %s584_s16, %s782_s16   ;;  %s540_s15 = sphi %s582_s15, %s781_s15  }
   0x7   : > { %p41_p0 = scmp.ne.s32.totalorder %s544_s16, %s540_s15  ;;  %p762_p1 = scmp.eq.s32.totalorder %s603_s19, 0 }
   0x8   : > { %p134_p3 = scmp.eq.s32.totalorder %s355_s20, 1  ;;  %p356_p5 = scmp.ge.s32.totalorder %s552_s18, 1 }
   0x9   : > { %p612_p4 = por %p762_p1, %p41_p0  ;;  %p141_p7 = scmp.lt.s32.totalorder %s552_s18, 3 }
   0xa   : > { %p617_p6 = por %p134_p3, %p41_p0  ;;  %s554_s24 = smov [#allocation5]  }
   0xb   : > { %s766_s21 = scalar_select %p612_p4, 1, 0 }
   0xc   : > { %s767_s22 = scalar_select %p617_p6, 1, 0 }
   0xd   : > { %p622_p8 = pnand %p356_p5, %p141_p7  ;;  %s154_s25 = sshll.u32 %s554_s24, 4  ;;  %s155_s25 = int_to_ptr.vmem [resolvable:$true] %s154_s25 }
   0xe   : > { %s630_s26 = sadd.s32 1, %s552_s18   ;;  %s28_s30 = sadd.s32 1, %s548_s17 }
   0xf   : > { %s768_s23 = scalar_select %p622_p8, 1, 0 }
  0x10   : > { %p379_p10 = pneg %p622_p8  ;;  %s25_s28 = ssub.s32 %s552_s18, %s630_s26 }
  0x11   : > { %p640_p12 = scmp.eq.s32.totalorder %s25_s28, 0  ;;  %p35_p13 = scmp.ne.s32.totalorder %s548_s17, %s544_s16 }
  0x12   : > { %p634_p11 = pnand %p379_p10, %p762_p1  ;;  %s441_s5 = scalar_lea.vmem %s155_s25, 128 }
  0x13   : > { %p442_p3 = scmp.ne.s32.totalorder %s155_s25, %s441_s5  ;;  %p449_p9 = scmp.lt.s32.totalorder %s155_s25, %s155_s25 }
  0x14   : > { %p432_p0 = pneg %p634_p11  ;;  %p450_p2 = scmp.lt.s32.totalorder %s441_s5, %s441_s5 }
  0x16   : > { %p444_p5 = pnand %p442_p3, %p432_p0  ;;  %p451_p10 = por %p450_p2, %p449_p9 }
  0x18   : > { %p445_p7 = pneg %p444_p5 }
  0x1a   : > { %p452_p1 = pnand %p451_p10, %p445_p7 }
  0x1c   : > { %455 = shalt.err (!%p452_p1)
}
  0x1d   : > { %382 = dma.hbm_to_vmem [thread:$0]  (!%p634_p11), %s758_s1, 128, %s155_s25, [#allocation6]  }
  0x1e   : > { %s657_s8 = scalar_select %p640_p12, %s548_s17, %s28_s30  }
  0x1f   : > { %p36_p1 = scmp.eq.s32.totalorder %s552_s18, 0  ;;  %p771_p2 = scmp.eq.s32.totalorder %s603_s19, 1 }
  0x20   : > { %p392_p0 = scmp.lt.s32.totalorder %s552_s18, 2  ;;  %s171_s10 = sand.u32 1, %s548_s17  }
  0x21   : > { %p665_p9 = por %p771_p2, %p35_p13  ;;  %p37_p3 = por %p36_p1, %p35_p13 }
  0x22   : > { %s359_s11 = sshll.u32 %s171_s10, 3  ;;  %s360_s12 = sshll.u32 %s552_s18, 7 }
  0x23   : > { %s772_s9 = scalar_select %p665_p9, 1, 0 }
  0x24   : > { %s678_s20 = scalar_lea.hbm %s757_s0, %s360_s12  ;;  %s175_s24 = scalar_lea.vmem [#allocation2], %s359_s11 }
  0x25   : > { %s182_s25 = sshll.u32 %s175_s24, 4  ;;  %p680_p11 = pnand %p392_p0, %p37_p3  ;;  %s183_s25 = int_to_ptr.vmem [resolvable:$true] %s182_s25 }
  0x26   : > { %s172_s28 = scalar_lea.sflag [#allocation3], %s171_s10  ;;  %s456_s29 = scalar_lea.hbm %s678_s20, 128 }
  0x27   : > { %p457_p12 = scmp.ne.s32.totalorder %s678_s20, %s456_s29  ;;  %p458_p13 = pneg %p680_p11 }
  0x28   : > { %s461_s6 = scalar_lea.hbm %s757_s0, 256  ;;  %p462_p10 = scmp.lt.s32.totalorder %s678_s20, %s757_s0 }
  0x29   : > { %p459_p5 = pnand %p458_p13, %p457_p12  ;;  %p463_p1 = scmp.lt.s32.totalorder %s461_s6, %s456_s29 }
  0x2b   : > { %p460_p7 = pneg %p459_p5  ;;  %p464_p2 = por %p463_p1, %p462_p10 }
  0x2d   : > { %p465_p0 = pnand %p464_p2, %p460_p7 }
  0x2f   : > { %468 = shalt.err (!%p465_p0)
}
  0x30   : > { %s469_s12 = scalar_lea.vmem %s183_s25, 128  ;;  %s555_s10 = smov [#allocation2]  }
  0x31   : > { %p470_p3 = scmp.ne.s32.totalorder %s183_s25, %s469_s12  ;;  %s474_s13 = sshll.u32 %s555_s10, 4  ;;  %s475_s13 = int_to_ptr.vmem [resolvable:$false] %s474_s13 }
  0x32   : > { %s476_s14 = scalar_lea.vmem %s475_s13, 256  ;;  %p477_p12 = scmp.lt.s32.totalorder %s183_s25, %s475_s13 }
  0x33   : > { %p472_p6 = pnand %p470_p3, %p458_p13  ;;  %p478_p5 = scmp.lt.s32.totalorder %s476_s14, %s469_s12 }
  0x35   : > { %p473_p9 = pneg %p472_p6  ;;  %p479_p4 = por %p478_p5, %p477_p12 }
  0x37   : > { %p480_p8 = pnand %p479_p4, %p473_p9 }
  0x39   : > { %483 = shalt.err (!%p480_p8)
}
  0x3a   : > { %386 = dma.hbm_to_vmem [thread:$0]  (!%p680_p11), %s678_s20, 128, %s183_s25, %s172_s28  }
  0x3b   : > { %p774_p7 = scmp.ne.s32.totalorder %s768_s23, 0 }
  0x3c   : > { %s701_s24 = sand.u32 (!%p774_p7), 1, %s544_s16   ;;  %p775_p6 = scmp.ne.s32.totalorder (!%p774_p7), %s766_s21, 0 }
  0x3d   : > { %191 = sbr.rel (%p774_p7) target bundleno = 394 (0x18a), region = 36  ;;  %s362_s29 = sshll.u32 (!%p774_p7), %s701_s24, 3 }
  0x3e   : > { %s194_s30 = scalar_lea.sflag (!%p774_p7), [#allocation3], %s701_s24  ;;  %s197_s5 = scalar_lea.vmem (!%p774_p7), [#allocation2], %s362_s29 }
  0x42   : > { %527 = dma.done.wait (%p775_p6), %s194_s30, 128  }
  0x43   : > { %529 = vsyncadd (%p775_p6), %s194_s30, 4294967168  ;;  %p776_p4 = scmp.eq.s32.totalorder %s603_s19, 0 }
  0x45   : > { %531 = dma.done.wait (%p776_p4), [#allocation6], 128   ;;  %p777_p8 = pmov %p776_p4 }
  0x46   : > { %v226_v0 = vld [vmem:[#allocation5] sm:$0xff]  ;;  %v227_v1 = vld [vmem:[%s197_s5] sm:$0xff]  ;;  %vm229_vm0 = vcmask 261120   ;;  %s368_s27 = sshll.u32 %s603_s19, 7  ;;  %s225_s28 = scalar_lea.vmem [#allocation7], %s362_s29 }
  0x47   : > { %533 = vsyncadd (%p777_p8), [#allocation6], 4294967168  ;;  %v228_v2 = vadd.f32 %v227_v1, %v226_v0  ;;  %v365_v13 = vld [vmem:[%s759_s2] ss:$0 sm:$0xff]  ;;  %s275_s6 = sshll.u32 %s225_s28, 4  ;;  %s273_s12 = scalar_lea.hbm %s761_s4, %s368_s27  ;;  %s276_s6 = int_to_ptr.vmem [resolvable:$true] %s275_s6 }
  0x48   : > { %v366_v15 = vld [vmem:[%s760_s3] ss:$0 sm:$0xff]  ;;  %s262_s10 = scalar_lea.sflag [#allocation4], %s701_s24  ;;  %s484_s13 = scalar_lea.vmem %s276_s6, 128 }
  0x49   : > { %v230_v3 = vsel %vm229_vm0, %v228_v2, 0.0  ;;  %p485_p9 = scmp.ne.s32.totalorder %s276_s6, %s484_s13  ;;  %p778_p11 = scmp.ne.s32.totalorder %s772_s9, 0 }
  0x4a   : > { %231 = vadd.xlane.f32.xlu0 %v230_v3  ;;  %s556_s14 = smov [#allocation7]  }
  0x4b   : > { %p486_p13 = pnand %p485_p9, %p778_p11  ;;  %s488_s30 = sshll.u32 %s556_s14, 4  ;;  %s489_s30 = int_to_ptr.vmem [resolvable:$false] %s488_s30 }
  0x4c   : > { %s490_s19 = scalar_lea.vmem %s489_s30, 256  ;;  %p491_p1 = scmp.lt.s32.totalorder %s276_s6, %s489_s30 }
  0x4d   : > { %p487_p10 = pneg %p486_p13  ;;  %p492_p2 = scmp.lt.s32.totalorder %s490_s19, %s484_s13 }
  0x4f   : > { %p493_p0 = por %p492_p2, %p491_p1 }
  0x51   : > { %p494_p3 = pnand %p493_p0, %p487_p10 }
  0xd3   : > { %v232_v4 = vpop.xlane.xlu0 %231 }
  0xd4   : > { %v234_v5 = vmul.f32 0.03125, %v232_v4 }
  0xd6   : > { %v235_v6 = vsub.f32 %v228_v2, %v234_v5 }
  0xd8   : > { %v236_v7 = vmul.f32 %v235_v6, %v235_v6 }
  0xda   : > { %v237_v8 = vsel %vm229_vm0, %v236_v7, 0.0 }
  0xdb   : > { %238 = vadd.xlane.f32.xlu0 %v237_v8 }
 0x164   : > { %v239_v9 = vpop.xlane.xlu0 %238 }
 0x165   : > { %v240_v10 = vmul.f32 0.03125, %v239_v9 }
 0x167   : > { %v241_v11 = vadd.f32 1e-12, %v240_v10 }
 0x169   : > { %428 = vrsqrt.f32 %v241_v11 }
 0x176   : > { %v429_v12 = vpop.eup %428 }
 0x177   : > { %v243_v14 = vmul.f32 %v429_v12, %v235_v6 }
 0x179   : > { %v251_v16 = vmul.f32 %v365_v13, %v243_v14 }
 0x17b   : > { %v259_v17 = vadd.f32 %v366_v15, %v251_v16 }
 0x17d   : > { %260 = vst.msk [vmem:[%s225_s28] sm:$0xff] %vm229_vm0, %v259_v17 }
 0x17e   : > { %497 = shalt.err (!%p494_p3)
}
 0x17f   : > { %s498_s29 = scalar_lea.hbm %s273_s12, 128  ;;  %s502_s21 = scalar_lea.hbm %s761_s4, 256 }
 0x180   : > { %p499_p12 = scmp.ne.s32.totalorder %s273_s12, %s498_s29  ;;  %p503_p6 = scmp.lt.s32.totalorder %s273_s12, %s761_s4 }
 0x181   : > { %p504_p4 = scmp.lt.s32.totalorder %s502_s21, %s498_s29 }
 0x182   : > { %p500_p5 = pnand %p499_p12, %p778_p11 }
 0x183   : > { %p505_p8 = por %p504_p4, %p503_p6 }
 0x184   : > { %p501_p7 = pneg %p500_p5 }
 0x186   : > { %p506_p9 = pnand %p505_p8, %p501_p7 }
 0x188   : > { %509 = shalt.err (!%p506_p9)
}
 0x189   : > { %377 = dma.vmem_to_hbm [thread:$0]  (%p778_p11), %s276_s6, 128, %s273_s12, %s262_s10  }
 0x18a PF: > { %s287_s25 = sand.u32 1, %s540_s15   ;;  %p779_p13 = scmp.ne.s32.totalorder %s767_s22, 0 }
 0x18b   : > { %p780_p10 = scmp.ge.s32.totalorder %s552_s18, 2  ;;  %s288_s27 = scalar_lea.sflag [#allocation4], %s287_s25 }
 0x18d   : > { %p388_p1 = pnand %p780_p10, %p779_p13 }
 0x18f   : > { %p389_p2 = pneg %p388_p1 }
 0x191   : > { %535 = dma.done.wait (%p389_p2), %s288_s27, 128  }
 0x192   : > { %537 = vsyncadd (%p389_p2), %s288_s27, 4294967168  ;;  %p18_p0 = scmp.ge.s32.totalorder %s630_s26, 4   ;;  %s781_s15 = smov %s544_s16 }
 0x193   : > { %s782_s16 = smov %s548_s17  ;;  %s783_s17 = smov %s657_s8 }
 0x194   : > { %s784_s18 = smov %s630_s26  ;;  %20 = sbr.rel (!%p18_p0) target bundleno = 6 (0x6), region = 85 }
 0x199   :  { %293 = vsyncpa [#allocation3], 1 }
 0x19a   :  { %295 = vsyncpa [#allocation3 + $0x1], 1 }
 0x19b   :  { %296 = vsyncpa [#allocation6], 1 }
 0x19c   :  { %297 = vsyncpa [#allocation4], 1 }
 0x19d   :  { %299 = vsyncpa [#allocation4 + $0x1], 1 }

</bundles_post_ra>
